<compile_context>
chip_gen: v7x
topology: tpu7x:2x2x1
jax: 0.10.0
libtpu: 0.0.40
codegen_flags: <defaults>
</compile_context>

<pallas_src>
import math

import jax
import jax.numpy as jnp
from jax import lax
from jax.experimental import pallas as pl
from jax.experimental.pallas import tpu as pltpu


def _round_up(x, m):
    return (x + m - 1) // m * m


def _cdiv(a, b):
    return -(-a // b)


def _vmem_cap_bytes():
    """Physical per-core VMEM; conservative (v7x) fallback if query fails."""
    try:
        info = pltpu.get_tpu_info()
        cap = getattr(info, "vmem_capacity_bytes", None)
        if cap:
            return int(cap)
    except Exception:
        pass
    return 64 * 1024 * 1024


_INV_SQRT2 = 0.7071067811865476
_SQRT_2_OVER_PI = 0.7978845608028654


def _gelu_erf(h):
    # Exact GELU (PyTorch nn.GELU default).
    return 0.5 * h * (1.0 + lax.erf(h * _INV_SQRT2))


def _gelu_tanh(h):
    # Tanh approximation -> EUP slot (free next to the MXU); opt-in only.
    return 0.5 * h * (1.0 + jnp.tanh(_SQRT_2_OVER_PI * (h + 0.044715 * h * h * h)))


def _make_ffn_kernel(use_scratch, approx_gelu):
    gelu = _gelu_tanh if approx_gelu else _gelu_erf

    if use_scratch:
        # Generic path (bf16/fp8/... outputs): f32 accumulator scratch.
        def kernel(x_ref, w1_ref, b1_ref, w2_ref, b2_ref, o_ref, acc_ref):
            k = pl.program_id(1)

            @pl.when(k == 0)
            def _init():
                # Fold fc2 bias into the accumulator init (one-time broadcast).
                acc_ref[...] = jnp.broadcast_to(
                    b2_ref[...].astype(jnp.float32), acc_ref.shape)

            h = jnp.dot(x_ref[...], w1_ref[...],
                        preferred_element_type=jnp.float32)
            h = gelu(h + b1_ref[...].astype(jnp.float32))
            # dropout(p=0.0) == identity
            acc_ref[...] += jnp.dot(h.astype(w2_ref.dtype), w2_ref[...],
                                    preferred_element_type=jnp.float32)

            @pl.when(k == pl.num_programs(1) - 1)
            def _finalize():
                o_ref[...] = acc_ref[...].astype(o_ref.dtype)
    else:
        # f32-output path: the output block is resident across k, accumulate
        # into it directly (saves tm*d_out*4 bytes of VMEM + a full-tile copy).
        def kernel(x_ref, w1_ref, b1_ref, w2_ref, b2_ref, o_ref):
            k = pl.program_id(1)

            @pl.when(k == 0)
            def _init():
                o_ref[...] = jnp.broadcast_to(
                    b2_ref[...].astype(jnp.float32), o_ref.shape)

            h = jnp.dot(x_ref[...], w1_ref[...],
                        preferred_element_type=jnp.float32)
            h = gelu(h + b1_ref[...].astype(jnp.float32))
            # dropout(p=0.0) == identity
            o_ref[...] += jnp.dot(h.astype(w2_ref.dtype), w2_ref[...],
                                  preferred_element_type=jnp.float32)

    return kernel


def feed_forward(x, w1, b1, w2, b2, *, tm=512, th=None,
                 compute_dtype=None, approx_gelu=False):
    """x: [..., D_in]; w1: [D_in, H]; b1: [H]; w2: [H, D_out]; b2: [D_out].

    tm: requested token tile (rows); clamped to the row count, VMEM budget,
        dtype-correct sublane multiple, and split for >=2 parallel steps.
    th: requested hidden tile; None -> derived from the per-generation VMEM
        budget.  Always capped by that budget.
    compute_dtype: optional MXU operand dtype (e.g. jnp.bfloat16); biases and
        accumulation stay f32.  None keeps the native dtype (exact reference).
    approx_gelu: use tanh GELU (EUP path) instead of exact erf.
    """
    orig_shape = x.shape
    d_in, hid = w1.shape
    d_out = w2.shape[1]
    out_dtype = x.dtype

    x2 = x.reshape(-1, d_in)
    m = x2.shape[0]

    cdt = jnp.dtype(compute_dtype) if compute_dtype is not None else jnp.dtype(x.dtype)
    wdt = jnp.dtype(compute_dtype) if compute_dtype is not None else jnp.dtype(w1.dtype)
    isz = cdt.itemsize
    wsz = wdt.itemsize
    bsz = jnp.dtype(b1.dtype).itemsize
    osz = jnp.dtype(out_dtype).itemsize

    # Lane-dense feature padding (multiples of 128).  256-alignment can avoid
    # half-filled MXU passes on v6e/v7x, but the extra zero-pad compute usually
    # cancels the gain unless dims are already 256-aligned, so keep 128 here.
    d_in_p = _round_up(d_in, 128)
    d_out_p = _round_up(d_out, 128)
    hid_128 = _round_up(hid, 128)

    use_scratch = jnp.dtype(out_dtype) != jnp.float32

    # Dtype-correct sublane multiple: 8 (f32), 16 (bf16), 32 (int8/fp8).
    sub = max(8, 32 // isz)
    m_sub = _round_up(m, sub)
    tm_eff = _round_up(min(tm, m_sub), sub)

    vmem_cap = _vmem_cap_bytes()
    budget = int(0.8 * vmem_cap)
    # Deeper weight pipelining only where VMEM is plentiful (v5e/v6e 128 MiB).
    weight_buffers = 3 if (vmem_cap >= 100 * 1024 * 1024
                           and hasattr(pl, "Buffered")) else 2

    def _fixed_bytes(tm_):
        fb = (2 * tm_ * d_in_p * isz       # x tile, double buffered
              + 2 * tm_ * d_out_p * osz    # out tile, double buffered
              + 2 * d_out_p * bsz)         # fc2 bias
        if use_scratch:
            fb += tm_ * d_out_p * 4        # f32 accumulator scratch
        return fb

    # Shrink the token tile if the non-weight footprint alone crowds VMEM.
    while _fixed_bytes(tm_eff) > budget // 2 and tm_eff > sub:
        tm_eff = max(sub, _round_up(tm_eff // 2, sub))

    # Guarantee >= 2 steps on the parallel (token) axis when rows allow it,
    # so 2-TC chips (v7x) / megacore can shard it.
    if _cdiv(m_sub, tm_eff) < 2 and m_sub >= 2 * sub:
        tm_eff = _round_up(_cdiv(m_sub, 2), sub)
    m_p = _round_up(m_sub, tm_eff)
    n_tok = m_p // tm_eff

    # Hidden tile from the VMEM budget; then pick the k-tile count first and
    # the tile size second so hidden padding stays < 128 columns.
    per_th = weight_buffers * ((d_in_p + d_out_p) * wsz + bsz)
    th_budget = max(128, ((budget - _fixed_bytes(tm_eff)) // max(per_th, 1))
                    // 128 * 128)
    th_req = th_budget if th is None else th
    th_req = max(128, min(th_req, th_budget, hid_128) // 128 * 128)
    k_tiles = _cdiv(hid_128, th_req)
    th_eff = _round_up(_cdiv(hid_128, k_tiles), 128)
    hid_p = k_tiles * th_eff

    # Zero-padding is exact: padded input features hit zero w1 rows, padded
    # hidden units have zero weights+bias (GELU(0)=0), padded outputs sliced.
    x2_p = jnp.pad(x2, ((0, m_p - m), (0, d_in_p - d_in)))
    w1_p = jnp.pad(w1, ((0, d_in_p - d_in), (0, hid_p - hid)))
    b1_p = jnp.pad(b1, (0, hid_p - hid)).reshape(1, hid_p)
    w2_p = jnp.pad(w2, ((0, hid_p - hid), (0, d_out_p - d_out)))
    b2_p = jnp.pad(b2, (0, d_out_p - d_out)).reshape(1, d_out_p)
    if compute_dtype is not None:
        x2_p = x2_p.astype(compute_dtype)
        w1_p = w1_p.astype(compute_dtype)
        w2_p = w2_p.astype(compute_dtype)

    # VMEM footprint estimate -> scoped limit, capped at ~90% of physical.
    tile_bytes = (2 * tm_eff * d_in_p * isz
                  + weight_buffers * (d_in_p * th_eff * wsz
                                      + th_eff * bsz
                                      + th_eff * d_out_p * wsz)
                  + 2 * d_out_p * bsz
                  + 2 * tm_eff * d_out_p * osz)
    if use_scratch:
        tile_bytes += tm_eff * d_out_p * 4
    vmem_limit = int(min(0.9 * vmem_cap,
                         max(32 * 1024 * 1024, 1.25 * tile_bytes)))

    cost = pl.CostEstimate(
        flops=2 * m_p * (d_in_p * hid_p + hid_p * d_out_p),
        transcendentals=m_p * hid_p,
        bytes_accessed=int(x2_p.size * isz
                           + n_tok * (w1_p.size * wsz + w2_p.size * wsz
                                      + b1_p.size * bsz + b2_p.size * bsz)
                           + m_p * d_out_p * osz),
    )

    wkw = ({"pipeline_mode": pl.Buffered(weight_buffers)}
           if weight_buffers > 2 else {})
    in_specs = [
        pl.BlockSpec((tm_eff, d_in_p), lambda i, k: (i, 0)),
        pl.BlockSpec((d_in_p, th_eff), lambda i, k: (0, k), **wkw),
        pl.BlockSpec((1, th_eff), lambda i, k: (0, k), **wkw),
        pl.BlockSpec((th_eff, d_out_p), lambda i, k: (k, 0), **wkw),
        pl.BlockSpec((1, d_out_p), lambda i, k: (0, 0)),
    ]
    scratch = ([pltpu.VMEM((tm_eff, d_out_p), jnp.float32)]
               if use_scratch else [])

    out = pl.pallas_call(
        _make_ffn_kernel(use_scratch, approx_gelu),
        out_shape=jax.ShapeDtypeStruct((m_p, d_out_p), out_dtype),
        grid_spec=pltpu.PrefetchScalarGridSpec(
            num_scalar_prefetch=0,
            grid=(n_tok, hid_p // th_eff),        # reduction (hidden) last
            in_specs=in_specs,
            out_specs=pl.BlockSpec((tm_eff, d_out_p), lambda i, k: (i, 0)),
            scratch_shapes=scratch,
        ),
        compiler_params=pltpu.CompilerParams(
            dimension_semantics=("parallel", "arbitrary"),
            vmem_limit_bytes=vmem_limit,
        ),
        cost_estimate=cost,
    )(x2_p, w1_p, b1_p, w2_p, b2_p)

    out = out[:m, :d_out]
    return out.reshape(*orig_shape[:-1], d_out)


def _init_linear(key, fan_in, fan_out, dtype=jnp.float32):
    """PyTorch nn.Linear default init; weight returned as [fan_in, fan_out]."""
    kw, kb = jax.random.split(key)
    bound = 1.0 / math.sqrt(fan_in)
    w = jax.random.uniform(kw, (fan_in, fan_out), dtype, -bound, bound)
    b = jax.random.uniform(kb, (fan_out,), dtype, -bound, bound)
    return w, b


def _reference(x, w1, b1, w2, b2):
    h = x @ w1 + b1
    h = jax.nn.gelu(h, approximate=False)
    return h @ w2 + b2


# TODO(synk): stochastic dropout (pltpu.prng_seed / prng_random_bits) if p > 0
# is ever required; p=0.0 (inference) is the identity and is omitted.

if __name__ == "__main__":
    key = jax.random.PRNGKey(0)
    k_x, k_fc1, k_fc2 = jax.random.split(key, 3)

    # Small shapes consistent with a token-wise MLP:
    # batch=2, seq=8, features=32, hidden=64.
    batch, seq, in_features = 2, 8, 32
    hidden_features = 64
    out_features = in_features

    x = jax.random.normal(k_x, (batch, seq, in_features), dtype=jnp.float32)
    w1, b1 = _init_linear(k_fc1, in_features, hidden_features)
    w2, b2 = _init_linear(k_fc2, hidden_features, out_features)

    y = feed_forward(x, w1, b1, w2, b2)
    y = jax.block_until_ready(y)

    y_ref = _reference(x, w1, b1, w2, b2)
    assert y.shape == (batch, seq, out_features)
    assert jnp.allclose(y, y_ref, atol=1e-5, rtol=1e-5), "mismatch vs reference"

    print("KERNEL_OK")
</pallas_src>

<mosaic_0001>
module attributes {stable_mosaic.version = 11 : i64} {
  func.func @kernel(%arg0: i32, %arg1: i32, %arg2: memref<8x128xf32, #tpu.memory_space<vmem>>, %arg3: memref<128x128xf32, #tpu.memory_space<vmem>>, %arg4: memref<1x128xf32, #tpu.memory_space<vmem>>, %arg5: memref<128x128xf32, #tpu.memory_space<vmem>>, %arg6: memref<1x128xf32, #tpu.memory_space<vmem>>, %arg7: memref<8x128xf32, #tpu.memory_space<vmem>>) attributes {dimension_semantics = [#tpu.dimension_semantics<parallel>, #tpu.dimension_semantics<arbitrary>], iteration_bounds = array<i64: 2, 1>, scalar_prefetch = 0 : i64, scratch_operands = 0 : i64, tpu.core_type = #tpu.core_type<tc>, window_params = [{transform_indices = @transform_0, window_bounds = array<i64: 8, 128>}, {transform_indices = @transform_1, window_bounds = array<i64: 128, 128>}, {transform_indices = @transform_2, window_bounds = array<i64: 1, 128>}, {transform_indices = @transform_3, window_bounds = array<i64: 128, 128>}, {pipeline_mode = #tpu.pipeline_mode<synchronous>, transform_indices = @transform_4, window_bounds = array<i64: 1, 128>}, {transform_indices = @transform_5, window_bounds = array<i64: 8, 128>}]} {
    %c0_i32 = arith.constant 0 : i32
    %0 = arith.cmpi eq, %arg1, %c0_i32 : i32
    %1 = arith.extui %0 : i1 to i32
    %c0_i32_0 = arith.constant 0 : i32
    %2 = arith.cmpi ne, %1, %c0_i32_0 : i32
    scf.if %2 {
      %c0_16 = arith.constant 0 : index
      %c0_17 = arith.constant 0 : index
      %22 = vector.load %arg6[%c0_16, %c0_17] : memref<1x128xf32, #tpu.memory_space<vmem>>, vector<1x128xf32>
      %23 = vector.shape_cast %22 : vector<1x128xf32> to vector<1x128xf32>
      %24 = vector.broadcast %23 : vector<1x128xf32> to vector<8x128xf32>
      %c0_18 = arith.constant 0 : index
      %c0_19 = arith.constant 0 : index
      %25 = vector.load %arg7[%c0_18, %c0_19] : memref<8x128xf32, #tpu.memory_space<vmem>>, vector<8x128xf32>
      tpu.vector_store %arg7[%c0_18, %c0_19], %24 {strides = array<i32>} : memref<8x128xf32, #tpu.memory_space<vmem>>, vector<8x128xf32>,
    } else {
    }
    %c0 = arith.constant 0 : index
    %c0_1 = arith.constant 0 : index
    %3 = vector.load %arg2[%c0, %c0_1] : memref<8x128xf32, #tpu.memory_space<vmem>>, vector<8x128xf32>
    %c0_2 = arith.constant 0 : index
    %c0_3 = arith.constant 0 : index
    %4 = vector.load %arg3[%c0_2, %c0_3] : memref<128x128xf32, #tpu.memory_space<vmem>>, vector<128x128xf32>
    %cst = arith.constant dense<0.000000e+00> : vector<8x128xf32>
    %5 = tpu.matmul %3, %4, %cst {dimension_numbers = #tpu.dot_dimension_numbers<[1], [0], [0], [1], [0, 0, 1, 1], [], []>} : vector<8x128xf32>, vector<128x128xf32>, vector<8x128xf32> -> vector<8x128xf32>
    %c0_4 = arith.constant 0 : index
    %c0_5 = arith.constant 0 : index
    %6 = vector.load %arg4[%c0_4, %c0_5] : memref<1x128xf32, #tpu.memory_space<vmem>>, vector<1x128xf32>
    %7 = vector.broadcast %6 : vector<1x128xf32> to vector<8x128xf32>
    %8 = arith.addf %5, %7 : vector<8x128xf32>
    %cst_6 = arith.constant 5.000000e-01 : f32
    %9 = vector.broadcast %cst_6 : f32 to vector<8x128xf32>
    %10 = arith.mulf %9, %8 : vector<8x128xf32>
    %cst_7 = arith.constant 0.707106769 : f32
    %11 = vector.broadcast %cst_7 : f32 to vector<8x128xf32>
    %12 = arith.mulf %8, %11 : vector<8x128xf32>
    %13 = math.erf %12 : vector<8x128xf32>
    %cst_8 = arith.constant 1.000000e+00 : f32
    %14 = vector.broadcast %cst_8 : f32 to vector<8x128xf32>
    %15 = arith.addf %14, %13 : vector<8x128xf32>
    %16 = arith.mulf %10, %15 : vector<8x128xf32>
    %c0_9 = arith.constant 0 : index
    %c0_10 = arith.constant 0 : index
    %17 = vector.load %arg7[%c0_9, %c0_10] : memref<8x128xf32, #tpu.memory_space<vmem>>, vector<8x128xf32>
    %c0_11 = arith.constant 0 : index
    %c0_12 = arith.constant 0 : index
    %18 = vector.load %arg5[%c0_11, %c0_12] : memref<128x128xf32, #tpu.memory_space<vmem>>, vector<128x128xf32>
    %cst_13 = arith.constant dense<0.000000e+00> : vector<8x128xf32>
    %19 = tpu.matmul %16, %18, %cst_13 {dimension_numbers = #tpu.dot_dimension_numbers<[1], [0], [0], [1], [0, 0, 1, 1], [], []>} : vector<8x128xf32>, vector<128x128xf32>, vector<8x128xf32> -> vector<8x128xf32>
    %20 = arith.addf %17, %19 : vector<8x128xf32>
    %c0_14 = arith.constant 0 : index
    %c0_15 = arith.constant 0 : index
    %21 = vector.load %arg7[%c0_14, %c0_15] : memref<8x128xf32, #tpu.memory_space<vmem>>, vector<8x128xf32>
    tpu.vector_store %arg7[%c0_14, %c0_15], %20 {strides = array<i32>} : memref<8x128xf32, #tpu.memory_space<vmem>>, vector<8x128xf32>,
    return
  }
  func.func @transform_0(%arg0: i32, %arg1: i32) -> (i32, i32) {
    %c0_i32 = arith.constant 0 : i32
    %c0_i32_0 = arith.constant 0 : i32
    return %arg0, %c0_i32 : i32, i32
  }
  func.func @transform_1(%arg0: i32, %arg1: i32) -> (i32, i32) {
    %c0_i32 = arith.constant 0 : i32
    %c0_i32_0 = arith.constant 0 : i32
    return %c0_i32, %arg1 : i32, i32
  }
  func.func @transform_2(%arg0: i32, %arg1: i32) -> (i32, i32) {
    %c0_i32 = arith.constant 0 : i32
    %c0_i32_0 = arith.constant 0 : i32
    return %c0_i32, %arg1 : i32, i32
  }
  func.func @transform_3(%arg0: i32, %arg1: i32) -> (i32, i32) {
    %c0_i32 = arith.constant 0 : i32
    %c0_i32_0 = arith.constant 0 : i32
    return %arg1, %c0_i32 : i32, i32
  }
  func.func @transform_4(%arg0: i32, %arg1: i32) -> (i32, i32) {
    %c0_i32 = arith.constant 0 : i32
    %c0_i32_0 = arith.constant 0 : i32
    %c0_i32_1 = arith.constant 0 : i32
    return %c0_i32, %c0_i32_0 : i32, i32
  }
  func.func @transform_5(%arg0: i32, %arg1: i32) -> (i32, i32) {
    %c0_i32 = arith.constant 0 : i32
    %c0_i32_0 = arith.constant 0 : i32
    return %arg0, %c0_i32 : i32, i32
  }
}

</mosaic_0001>

<bundles_post_ra>
// kernel: tpu_custom_call.1
= control target key start
LH: loop header
LB: loop body
LE: loop exit
PB: predicated region body
PF: predicated region fallthrough
CT: control target
= control target key end

     0   :  { %10 = vsyncpa [#allocation3], 0  ;;  %s1392_s0 = inlined_call_operand.hbm [shape: f32[16,128], index: 0, kind: input, shape index: {}]   ;;  %s1393_s1 = inlined_call_operand.hbm [shape: f32[128,128], index: 1, kind: input, shape index: {}]   ;;  %s1394_s2 = inlined_call_operand.vmem [shape: f32[1,128], index: 2, kind: input, shape index: {}]   ;;  %s1395_s3 = inlined_call_operand.hbm [shape: f32[128,128], index: 3, kind: input, shape index: {}]   ;;  %s1396_s4 = inlined_call_operand.vmem [shape: f32[1,128], index: 4, kind: input, shape index: {}]   ;;  %s1397_s5 = inlined_call_operand.hbm [shape: f32[16,128], index: 5, kind: output, shape index: {}]  }
   0x1   :  { %12 = vsyncpa [#allocation3 + $0x1], 0 }
   0x2   :  { %13 = vsyncpa [#allocation6], 0 }
   0x3   :  { %14 = vsyncpa [#allocation4], 0 }
   0x4   :  { %16 = vsyncpa [#allocation4 + $0x1], 0  ;;  %s1113_s18 = smov 0   ;;  %s1115_s19 = smov 0  }
   0x5   :  { %s1117_s20 = smov 0   ;;  %s1119_s21 = smov 0  }
   0x6   :  { %s1121_s22 = smov 0   ;;  %s1123_s23 = smov 0  }
   0x7 LB: > { %s638_s24 = sadd.s32 4294967295, %s1072_s23   ;;  %s639_s25 = sadd.s32 4294967294, %s1072_s23   ;;  %s1072_s23 = sphi %s1123_s23, %s22_s23   ;;  %s1068_s22 = sphi %s1121_s22, %s1419_s22   ;;  %s1064_s21 = sphi %s1119_s21, %s1418_s21   ;;  %s1060_s20 = sphi %s1117_s20, %s1417_s20   ;;  %s1056_s19 = sphi %s1115_s19, %s1416_s19   ;;  %s1052_s18 = sphi %s1113_s18, %s1415_s18  }
   0x8   : > { %p54_p0 = scmp.ne.s32.totalorder %s1056_s19, %s1052_s18  ;;  %p1147_p1 = scmp.eq.s32.totalorder %s638_s24, 0 }
   0x9   : > { %p1151_p2 = scmp.eq.s32.totalorder %s638_s24, 1  ;;  %p183_p3 = scmp.eq.s32.totalorder %s639_s25, 1 }
   0xa   : > { %s1402_s26 = scalar_select %p1147_p1, 1, 0 }
   0xb   : > { %p1157_p4 = por %p1147_p1, %p54_p0  ;;  %p640_p5 = scmp.ge.s32.totalorder %s1072_s23, 1 }
   0xc   : > { %p1162_p6 = por %p183_p3, %p54_p0  ;;  %p190_p7 = scmp.lt.s32.totalorder %s1072_s23, 3 }
   0xd   : > { %s1404_s28 = scalar_select %p1157_p4, 1, 0 }
   0xe   : > { %s1405_s29 = scalar_select %p1162_p6, 1, 0 }
   0xf   : > { %p1167_p8 = pnand %p640_p5, %p190_p7  ;;  %s1074_s6 = smov [#allocation5]  }
  0x10   : > { %s204_s7 = sshll.u32 %s1074_s6, 4  ;;  %s1075_s9 = smov [#allocation7]   ;;  %s1171_s7 = int_to_ptr.vmem [resolvable:$true] %s204_s7 }
  0x11   : > { %p822_p9 = pneg %p1167_p8  ;;  %s226_s10 = sshll.u32 %s1075_s9, 4  ;;  %s1182_s10 = int_to_ptr.vmem [resolvable:$true] %s226_s10 }
  0x12   : > { %s900_s13 = scalar_lea.hbm %s1393_s1, 2048 }
  0x13   : > { %p1178_p11 = pnand %p822_p9, %p1147_p1  ;;  %p901_p12 = scmp.ne.s32.totalorder %s1393_s1, %s900_s13 }
  0x14   : > { %p907_p5 = scmp.lt.u32.totalorder %s900_s13, %s1393_s1 }
  0x15   : > { %p902_p13 = pneg %p1178_p11 }
  0x17   : > { %p903_p0 = pnand %p902_p13, %p901_p12 }
  0x19   : > { %p904_p3 = pneg %p903_p0 }
  0x1b   : > { %p909_p7 = pnand %p907_p5, %p904_p3 }
  0x1d   : > { %912 = shalt.err (!%p909_p7)
}
  0x1e   : > { %s913_s24 = scalar_lea.vmem %s1171_s7, 2048  ;;  %p921_p1 = scmp.lt.s32.totalorder %s1171_s7, %s1171_s7 }
  0x1f   : > { %p914_p9 = scmp.ne.s32.totalorder %s1171_s7, %s913_s24  ;;  %p922_p12 = scmp.lt.s32.totalorder %s913_s24, %s913_s24 }
  0x21   : > { %p916_p10 = pnand %p914_p9, %p902_p13  ;;  %p923_p0 = por %p922_p12, %p921_p1 }
  0x23   : > { %p917_p6 = pneg %p916_p10 }
  0x25   : > { %p924_p4 = pnand %p923_p0, %p917_p6 }
  0x27   : > { %927 = shalt.err (!%p924_p4)
}
  0x28   : > { %s1076_s25 = smov 128   ;;  %s1077_s6 = smov 8  }
  0x29   : > { %825 = dma.hbm_to_vmem [thread:$0]  (!%p1178_p11), %s1393_s1, 2048, %s1171_s7, [#allocation6], %s1076_s25, %s1076_s25, %s1077_s6  }
  0x2a   : > { %s928_s14 = scalar_lea.hbm %s1395_s3, 2048 }
  0x2b   : > { %p929_p1 = scmp.ne.s32.totalorder %s1395_s3, %s928_s14  ;;  %p935_p10 = scmp.lt.u32.totalorder %s928_s14, %s1395_s3 }
  0x2d   : > { %p931_p4 = pnand %p929_p1, %p902_p13 }
  0x2f   : > { %p932_p6 = pneg %p931_p4 }
  0x31   : > { %p937_p3 = pnand %p935_p10, %p932_p6 }
  0x33   : > { %940 = shalt.err (!%p937_p3)
}
  0x34   : > { %s941_s7 = scalar_lea.vmem %s1182_s10, 2048  ;;  %p949_p12 = scmp.lt.s32.totalorder %s1182_s10, %s1182_s10 }
  0x35   : > { %p942_p5 = scmp.ne.s32.totalorder %s1182_s10, %s941_s7  ;;  %p950_p0 = scmp.lt.s32.totalorder %s941_s7, %s941_s7 }
  0x37   : > { %p944_p7 = pnand %p942_p5, %p902_p13  ;;  %p951_p1 = por %p950_p0, %p949_p12 }
  0x39   : > { %p945_p9 = pneg %p944_p7 }
  0x3b   : > { %p952_p4 = pnand %p951_p1, %p945_p9 }
  0x3d   : > { %955 = shalt.err (!%p952_p4)
}
  0x3e   : > { %828 = dma.hbm_to_vmem [thread:$0]  (!%p1178_p11), %s1395_s3, 2048, %s1182_s10, [#allocation6], %s1076_s25, %s1076_s25, %s1077_s6  }
  0x3f   : > { %s34_s12 = sadd.s32 1, %s1068_s22  ;;  %s41_s13 = sadd.s32 1, %s1060_s20 }
  0x40   : > { %p36_p13 = scmp.ge.s32.totalorder %s34_s12, 2  ;;  %p48_p6 = scmp.ne.s32.totalorder %s1060_s20, %s1056_s19 }
  0x41   : > { %p49_p10 = scmp.eq.s32.totalorder %s1072_s23, 0  ;;  %p839_p3 = scmp.lt.s32.totalorder %s1072_s23, 2 }
  0x42   : > { %s1421_s12 = smov (%p36_p13, %s34_s12), 0  ;;  %p1246_p7 = por %p1151_p2, %p48_p6 }
  0x43   : > { %p50_p5 = por %p49_p10, %p48_p6  ;;  %s38_s14 = ssub.s32 %s1068_s22, %s1421_s12 }
  0x44   : > { %s1408_s8 = scalar_select %p1246_p7, 1, 0 }
  0x45   : > { %s243_s15 = sand.u32 1, %s1060_s20   ;;  %p39_p9 = scmp.eq.s32.totalorder %s38_s14, 0 }
  0x46   : > { %s645_s10 = sshll.u32 %s243_s15, 3  ;;  %s646_s25 = sshll.u32 %s1068_s22, 7 }
  0x47   : > { %s1255_s6 = scalar_select %p39_p9, %s1060_s20, %s41_s13  }
  0x48   : > { %s1260_s24 = scalar_lea.hbm %s1392_s0, %s646_s25  ;;  %s247_s27 = scalar_lea.vmem [#allocation2], %s645_s10 }
  0x49   : > { %s254_s7 = sshll.u32 %s247_s27, 4  ;;  %p1264_p2 = pnand %p839_p3, %p50_p5  ;;  %s1268_s7 = int_to_ptr.vmem [resolvable:$true] %s254_s7 }
  0x4a   : > { %s244_s11 = scalar_lea.sflag [#allocation3], %s243_s15  ;;  %s956_s13 = scalar_lea.hbm %s1260_s24, 128 }
  0x4b   : > { %p957_p11 = scmp.ne.s32.totalorder %s1260_s24, %s956_s13  ;;  %p958_p12 = pneg %p1264_p2 }
  0x4c   : > { %s961_s25 = scalar_lea.hbm %s1392_s0, 256  ;;  %p962_p4 = scmp.lt.u32.totalorder %s1260_s24, %s1392_s0 }
  0x4d   : > { %p959_p0 = pnand %p958_p12, %p957_p11  ;;  %p963_p13 = scmp.lt.u32.totalorder %s961_s25, %s956_s13 }
  0x4e   : > { %p965_p10 = scmp.lt.u32.totalorder %s956_s13, %s1260_s24 }
  0x4f   : > { %p960_p1 = pneg %p959_p0  ;;  %p964_p6 = por %p963_p13, %p962_p4 }
  0x51   : > { %p966_p3 = por %p965_p10, %p964_p6 }
  0x53   : > { %p967_p5 = pnand %p966_p3, %p960_p1 }
  0x55   : > { %970 = shalt.err (!%p967_p5)
}
  0x56   : > { %s971_s15 = scalar_lea.vmem %s1268_s7, 128  ;;  %s1078_s27 = smov [#allocation2]  }
  0x57   : > { %p972_p9 = scmp.ne.s32.totalorder %s1268_s7, %s971_s15  ;;  %s976_s14 = sshll.u32 %s1078_s27, 4  ;;  %s977_s14 = int_to_ptr.vmem [resolvable:$false] %s976_s14 }
  0x58   : > { %s978_s10 = scalar_lea.vmem %s977_s14, 256  ;;  %p979_p7 = scmp.lt.s32.totalorder %s1268_s7, %s977_s14 }
  0x59   : > { %p974_p11 = pnand %p972_p9, %p958_p12  ;;  %p980_p4 = scmp.lt.s32.totalorder %s978_s10, %s971_s15 }
  0x5b   : > { %p975_p0 = pneg %p974_p11  ;;  %p981_p13 = por %p980_p4, %p979_p7 }
  0x5d   : > { %p982_p6 = pnand %p981_p13, %p975_p0 }
  0x5f   : > { %985 = shalt.err (!%p982_p6)
}
  0x60   : > { %832 = dma.hbm_to_vmem [thread:$0]  (!%p1264_p2), %s1260_s24, 128, %s1268_s7, %s244_s11  }
  0x61   : > { %263 = sbr.rel (%p1167_p8) target bundleno = 602 (0x25a), region = 40  ;;  %s1298_s13 = sand.u32 (!%p1167_p8), 1, %s1056_s19  }
  0x62   : > { %s648_s25 = sshll.u32 (!%p1167_p8), %s1298_s13, 3  ;;  %s266_s16 = scalar_lea.sflag (!%p1167_p8), [#allocation3], %s1298_s13 }
  0x63   : > { %s1304_s17 = scalar_lea.vmem (!%p1167_p8), [#allocation2], %s648_s25  ;;  %p1410_p7 = scmp.ne.s32.totalorder (!%p1167_p8), %s1404_s28, 0 }
  0x68   : > { %1039 = dma.done.wait (%p1410_p7), %s266_s16, 128  }
  0x69   : > { %1041 = vsyncadd (%p1410_p7), %s266_s16, 4294967168  ;;  %p1411_p2 = scmp.ne.s32.totalorder %s1402_s26, 0 }
  0x6b   : > { %1043 = dma.done.wait (%p1411_p2), [#allocation6], 4096  }
  0x6c   : > { %1045 = vsyncadd (%p1411_p2), [#allocation6], 4294963200  ;;  %v1079_v0 = vmov 0.0|0.0   ;;  %vm1080_vm0 = vmmov 0   ;;  %v1081_v1 = vmov 0.0   ;;  %v324_v2 = vld [vmem:[#allocation5] sm:$0xff] }
  0x6d   : > { %762 = vmatprep.subr.bf16.mxu0 %v1079_v0  ;;  %724 = vmatprep.mubr.msk.f32.mxu0 %vm1080_vm0, %v1081_v1  ;;  %v325_v3 = vld [vmem:[#allocation5 + $0x8] sm:$0xff]  ;;  %v326_v4 = vld [vmem:[#allocation5 + $0x10] sm:$0xff]  ;;  %v327_v6 = vld [vmem:[#allocation5 + $0x18] sm:$0xff]  ;;  %s655_s7 = sshll.u32 %s1064_s21, 7  ;;  %s306_s9 = scalar_lea.vmem [#allocation8], %s648_s25 }
  0x6e   : > { %786 = vmatprep.subr.bf16.mxu1 %v1079_v0  ;;  %759 = vmatprep.mubr.msk.f32.mxu1 %vm1080_vm0, %v1081_v1  ;;  %v763_v5 = vpack.c.bf16 %v325_v3, %v324_v2  ;;  %v766_v7 = vpack.c.bf16 %v327_v6, %v326_v4  ;;  %v328_v8 = vld [vmem:[#allocation5 + $0x20] sm:$0xff]  ;;  %v329_v9 = vld [vmem:[#allocation5 + $0x28] sm:$0xff]  ;;  %v425_v12 = vld [vmem:[#allocation7 + $0x10] sm:$0xff]  ;;  %s525_s11 = sshll.u32 %s306_s9, 4  ;;  %s1343_s14 = scalar_lea.hbm %s1397_s5, %s655_s7  ;;  %s1345_s11 = int_to_ptr.vmem [resolvable:$true] %s525_s11 }
  0x6f   : > { %v423_v10 = vld [vmem:[#allocation7] sm:$0xff]  ;;  %v424_v11 = vld [vmem:[#allocation7 + $0x8] sm:$0xff]  ;;  %v426_v13 = vld [vmem:[#allocation7 + $0x18] sm:$0xff]  ;;  %v769_v14 = vpack.c.bf16 %v329_v9, %v328_v8  ;;  %s512_s10 = scalar_lea.sflag [#allocation4], %s1298_s13  ;;  %s986_s16 = scalar_lea.vmem %s1345_s11, 128 }
  0x70   : > { %764 = vmatpush3.bf16.msra.mxu0 %v763_v5  ;;  %v787_v15 = vpack.c.bf16 %v424_v11, %v423_v10  ;;  %v330_v16 = vld [vmem:[#allocation5 + $0x30] sm:$0xff]  ;;  %v331_v17 = vld [vmem:[#allocation5 + $0x38] sm:$0xff]  ;;  %v790_v18 = vpack.c.bf16 %v426_v13, %v425_v12  ;;  %v427_v19 = vld [vmem:[#allocation7 + $0x20] sm:$0xff]  ;;  %p987_p8 = scmp.ne.s32.totalorder %s1345_s11, %s986_s16  ;;  %p1412_p12 = scmp.ne.s32.totalorder %s1408_s8, 0 }
  0x71   : > { %765 = vmatprep.subr.bf16.mxu0 %v1079_v0  ;;  %v428_v20 = vld [vmem:[#allocation7 + $0x28] sm:$0xff]  ;;  %v772_v21 = vpack.c.bf16 %v331_v17, %v330_v16  ;;  %v332_v22 = vld [vmem:[#allocation5 + $0x40] sm:$0xff]  ;;  %v334_v26 = vld [vmem:[#allocation5 + $0x50] sm:$0xff]  ;;  %s1082_s21 = smov [#allocation8]  }
  0x72   : > { %788 = vmatpush3.bf16.msra.mxu1 %v787_v15  ;;  %v333_v23 = vld [vmem:[#allocation5 + $0x48] sm:$0xff]  ;;  %v793_v24 = vpack.c.bf16 %v428_v20, %v427_v19  ;;  %v335_v27 = vld [vmem:[#allocation5 + $0x58] sm:$0xff]  ;;  %v336_v29 = vld [vmem:[#allocation5 + $0x60] sm:$0xff]  ;;  %p988_p1 = pnand %p987_p8, %p1412_p12  ;;  %s990_s25 = sshll.u32 %s1082_s21, 4  ;;  %s991_s25 = int_to_ptr.vmem [resolvable:$false] %s990_s25 }
  0x73   : > { %789 = vmatprep.subr.bf16.mxu1 %v1079_v0  ;;  %v775_v25 = vpack.c.bf16 %v333_v23, %v332_v22  ;;  %v778_v28 = vpack.c.bf16 %v335_v27, %v334_v26  ;;  %v337_v30 = vld [vmem:[#allocation5 + $0x68] sm:$0xff]  ;;  %v338_v32 = vld [vmem:[#allocation5 + $0x70] sm:$0xff]  ;;  %v339_v33 = vld [vmem:[#allocation5 + $0x78] sm:$0xff]  ;;  %p993_p3 = scmp.lt.s32.totalorder %s1345_s11, %s991_s25 }
  0x74   : > { %767 = vmatpush3.bf16.msra.mxu0 %v766_v7  ;;  %v781_v31 = vpack.c.bf16 %v337_v30, %v336_v29  ;;  %v784_v34 = vpack.c.bf16 %v339_v33, %v338_v32  ;;  %v323_v35 = vld [vmem:[%s1304_s17] sm:$0xff]  ;;  %v431_v39 = vld [vmem:[#allocation7 + $0x40] sm:$0xff]  ;;  %v432_v40 = vld [vmem:[#allocation7 + $0x48] sm:$0xff]  ;;  %p989_p10 = pneg %p988_p1  ;;  %s992_s17 = scalar_lea.vmem %s991_s25, 256 }
  0x75   : > { %768 = vmatprep.subr.bf16.mxu0 %v1079_v0  ;;  %v429_v36 = vld [vmem:[#allocation7 + $0x30] sm:$0xff]  ;;  %v430_v37 = vld [vmem:[#allocation7 + $0x38] sm:$0xff]  ;;  %v799_v41 = vpack.c.bf16 %v432_v40, %v431_v39  ;;  %v435_v45 = vld [vmem:[#allocation7 + $0x60] sm:$0xff]  ;;  %p994_p5 = scmp.lt.s32.totalorder %s992_s17, %s986_s16 }
  0x76   : > { %791 = vmatpush3.bf16.msra.mxu1 %v790_v18  ;;  %v796_v38 = vpack.c.bf16 %v430_v37, %v429_v36  ;;  %v433_v42 = vld [vmem:[#allocation7 + $0x50] sm:$0xff]  ;;  %v434_v43 = vld [vmem:[#allocation7 + $0x58] sm:$0xff]  ;;  %v436_v46 = vld [vmem:[#allocation7 + $0x68] sm:$0xff] }
  0x77   : > { %792 = vmatprep.subr.bf16.mxu1 %v1079_v0  ;;  %v802_v44 = vpack.c.bf16 %v434_v43, %v433_v42  ;;  %v805_v47 = vpack.c.bf16 %v436_v46, %v435_v45  ;;  %v437_v48 = vld [vmem:[#allocation7 + $0x70] sm:$0xff]  ;;  %v438_v49 = vld [vmem:[#allocation7 + $0x78] sm:$0xff]  ;;  %p995_p9 = por %p994_p5, %p993_p3 }
  0x78   : > { %770 = vmatpush3.bf16.msra.mxu0 %v769_v14  ;;  %v808_v50 = vpack.c.bf16 %v438_v49, %v437_v48  ;;  %v653_v51 = vld [vmem:[%s1394_s2] ss:$0 sm:$0xff] }
  0x79   : > { %771 = vmatprep.subr.bf16.mxu0 %v1079_v0  ;;  %v652_v60 = vld [vmem:[%s1396_s4] ss:$0 sm:$0xff]  ;;  %p996_p11 = pnand %p995_p9, %p989_p10 }
  0x7a   : > { %794 = vmatpush3.bf16.msra.mxu1 %v793_v24 }
  0x7b   : > { %795 = vmatprep.subr.bf16.mxu1 %v1079_v0 }
  0x7c   : > { %773 = vmatpush3.bf16.msra.mxu0 %v772_v21 }
  0x7d   : > { %774 = vmatprep.subr.bf16.mxu0 %v1079_v0 }
  0x7e   : > { %797 = vmatpush3.bf16.msra.mxu1 %v796_v38 }
  0x7f   : > { %798 = vmatprep.subr.bf16.mxu1 %v1079_v0 }
  0x80   : > { %776 = vmatpush3.bf16.msra.mxu0 %v775_v25 }
  0x81   : > { %777 = vmatprep.subr.bf16.mxu0 %v1079_v0 }
  0x82   : > { %800 = vmatpush3.bf16.msra.mxu1 %v799_v41 }
  0x83   : > { %801 = vmatprep.subr.bf16.mxu1 %v1079_v0 }
  0x84   : > { %779 = vmatpush3.bf16.msra.mxu0 %v778_v28 }
  0x85   : > { %780 = vmatprep.subr.bf16.mxu0 %v1079_v0 }
  0x86   : > { %803 = vmatpush3.bf16.msra.mxu1 %v802_v44 }
  0x87   : > { %804 = vmatprep.subr.bf16.mxu1 %v1079_v0 }
  0x88   : > { %782 = vmatpush3.bf16.msra.mxu0 %v781_v31 }
  0x89   : > { %783 = vmatprep.subr.bf16.mxu0 %v1079_v0 }
  0x8a   : > { %806 = vmatpush3.bf16.msra.mxu1 %v805_v47 }
  0x8b   : > { %807 = vmatprep.subr.bf16.mxu1 %v1079_v0 }
  0x8c   : > { %785 = vmatpush3.bf16.msra.mxu0 %v784_v34 }
  0x8e   : > { %809 = vmatpush3.bf16.msra.mxu1 %v808_v50 }
  0x8f   : > { %725 = vmatmul.mubr.f32.vlgmr.msra.gmra.mrb[0].mxu0 %v323_v35 }
 0x162   : > { %v413_v52 = vpop.f32.mrb[0].mxu0 }
 0x163   : > { %v414_v53 = vadd.f32 %v653_v51, %v413_v52  ;;  %v726_v54 = vpop.f32.mrb[1].mxu0 }
 0x165   : > { %v418_v55 = vmul.f32 0.70710677, %v414_v53  ;;  %v417_v57 = vmul.f32 0.5, %v414_v53 }
 0x167   : > { %898 = verf.f32 %v418_v55 }
 0x171   : > { %v899_v56 = vpop.eup %898 }
 0x172   : > { %v420_v58 = vadd.f32 1.0, %v899_v56 }
 0x174   : > { %v421_v59 = vmul.f32 %v420_v58, %v417_v57 }
 0x176   : > { %760 = vmatmul.mubr.f32.vlgmr.msra.gmra.mrb[0].mxu1 %v421_v59 }
 0x249   : > { %v505_v61 = vpop.f32.mrb[0].mxu1 }
 0x24a   : > { %v509_v62 = vadd.f32 %v652_v60, %v505_v61  ;;  %v761_v63 = vpop.f32.mrb[1].mxu1 }
 0x24c   : > { %510 = vst [vmem:[%s306_s9] sm:$0xff] %v509_v62 }
 0x24d   : > { %999 = shalt.err (!%p996_p11)
}
 0x24e   : > { %s1000_s13 = scalar_lea.hbm %s1343_s14, 128  ;;  %s1004_s30 = scalar_lea.hbm %s1397_s5, 256 }
 0x24f   : > { %p1001_p0 = scmp.ne.s32.totalorder %s1343_s14, %s1000_s13  ;;  %p1005_p6 = scmp.lt.u32.totalorder %s1343_s14, %s1397_s5 }
 0x250   : > { %p1006_p7 = scmp.lt.u32.totalorder %s1004_s30, %s1000_s13  ;;  %p1008_p8 = scmp.lt.u32.totalorder %s1000_s13, %s1343_s14 }
 0x251   : > { %p1002_p4 = pnand %p1001_p0, %p1412_p12 }
 0x252   : > { %p1007_p2 = por %p1006_p7, %p1005_p6 }
 0x253   : > { %p1003_p13 = pneg %p1002_p4 }
 0x254   : > { %p1009_p1 = por %p1008_p8, %p1007_p2 }
 0x256   : > { %p1010_p10 = pnand %p1009_p1, %p1003_p13 }
 0x258   : > { %1013 = shalt.err (!%p1010_p10)
}
 0x259   : > { %820 = dma.vmem_to_hbm [thread:$0]  (%p1412_p12), %s1345_s11, 128, %s1343_s14, %s512_s10  }
 0x25a PF: > { %s537_s9 = sand.u32 1, %s1052_s18   ;;  %p1413_p3 = scmp.ne.s32.totalorder %s1405_s29, 0 }
 0x25b   : > { %p1414_p5 = scmp.ge.s32.totalorder %s1072_s23, 2  ;;  %s538_s15 = scalar_lea.sflag [#allocation4], %s537_s9 }
 0x25d   : > { %p834_p9 = pnand %p1414_p5, %p1413_p3 }
 0x25f   : > { %1047 = dma.done.wait (!%p834_p9), %s538_s15, 128  }
 0x260   : > { %1049 = vsyncadd (!%p834_p9), %s538_s15, 4294967168  ;;  %s22_s23 = sadd.s32 1, %s1072_s23   ;;  %s1415_s18 = smov %s1056_s19 }
 0x261   : > { %p19_p11 = scmp.ge.s32.totalorder %s22_s23, 4   ;;  %s1416_s19 = smov %s1060_s20 }
 0x262   : > { %s1417_s20 = smov %s1255_s6  ;;  %s1418_s21 = smov %s1068_s22 }
 0x263   : > { %s1419_s22 = smov %s1421_s12  ;;  %21 = sbr.rel (!%p19_p11) target bundleno = 7 (0x7), region = 102 }
 0x26a   :  { %543 = vsyncpa [#allocation3], 1 }
 0x26b   :  { %545 = vsyncpa [#allocation3 + $0x1], 1 }
 0x26c   :  { %546 = vsyncpa [#allocation6], 1 }
 0x26d   :  { %547 = vsyncpa [#allocation4], 1 }
 0x26e   :  { %549 = vsyncpa [#allocation4 + $0x1], 1 }

</bundles_post_ra>
